<compile_context>
chip_gen: v7x
topology: tpu7x:2x2x1
jax: 0.10.0
libtpu: 0.0.40
codegen_flags: <defaults>
</compile_context>

<pallas_src>
import functools

import jax
import jax.numpy as jnp
from jax.experimental import pallas as pl
from jax.experimental.pallas import tpu as pltpu

LANE = 128  # TPU lane width (last-dim tiling unit)

# Below this weight size a standalone pallas_call is pure dispatch overhead vs. XLA's
# fused dot (review item #6).  The demo overrides this to 0 to exercise the kernel.
DEFAULT_MIN_PALLAS_WEIGHT_BYTES = 2 * 1024 * 1024


def _round_up(x, m):
    return (x + m - 1) // m * m


def film_kernel(x_ref, w_ref, b_ref, o_ref, *, d):
    # x_ref: [B, F]      f32  — cast to bf16 in-kernel (saves a separate XLA cast dispatch)
    # w_ref: [F, OD_pad] bf16 — whole weight resident in VMEM (single grid step)
    # b_ref: [1, OD_pad] f32
    # o_ref: [5, B, D]   f32  — grouped FiLM slabs; lane-dense stores since D % 128 == 0
    x_bf = x_ref[...].astype(jnp.bfloat16)
    acc = jnp.dot(x_bf, w_ref[...], preferred_element_type=jnp.float32) + b_ref[...]
    # Columns are pre-permuted to grouped (5, D) order, so slab s is a contiguous,
    # 128-aligned static lane slice — no in-kernel transpose needed.
    for s in range(5):
        o_ref[s] = acc[:, s * d:(s + 1) * d]


def prepare_film_params(w_torch, b_torch, output_dim):
    """Convert torch Linear params [out,in]/[out] into the kernel layout.

    - transpose to [in, out]
    - permute columns from (D,5)-interleaved to (5,D)-grouped order
    - zero-pad the output dim up to a multiple of 128 lanes only (review item #2)
    - cast the weight to bf16 (MXU-native input), keep the bias in f32
    """
    OD = 5 * output_dim
    F = w_torch.shape[1]
    assert w_torch.shape == (OD, F) and b_torch.shape == (OD,)

    # new column s*D + d  <-  old column d*5 + s
    perm = jnp.arange(OD).reshape(output_dim, 5).T.reshape(-1)
    w_t = jnp.transpose(w_torch)[:, perm]               # [F, OD], grouped by FiLM slab
    b_g = b_torch[perm]                                  # [OD],    grouped by FiLM slab

    OD_pad = _round_up(max(OD, LANE), LANE)
    w_pad = jnp.zeros((F, OD_pad), jnp.bfloat16).at[:, :OD].set(w_t.astype(jnp.bfloat16))
    b_pad = jnp.zeros((1, OD_pad), jnp.float32).at[:, :OD].set(b_g.astype(jnp.float32))
    return w_pad, b_pad


@functools.partial(
    jax.jit, static_argnames=("output_dim", "min_pallas_weight_bytes")
)
def cpx_film_forward(x, w_prepped, b_prepped, output_dim,
                     min_pallas_weight_bytes=DEFAULT_MIN_PALLAS_WEIGHT_BYTES):
    """x: [B, 512] f32 -> (gamma [3,B,D,1,1], beta [2,B,D,1,1]), both f32."""
    B, F = x.shape
    OD = 5 * output_dim
    OD_pad = w_prepped.shape[1]
    assert w_prepped.shape == (F, OD_pad) and b_prepped.shape == (1, OD_pad)
    assert OD_pad % LANE == 0

    weight_bytes = F * OD_pad * 2  # bf16
    lane_dense = (output_dim % LANE == 0) and (OD >= LANE)
    use_pallas = lane_dense and (weight_bytes >= min_pallas_weight_bytes)

    if not use_pallas:
        # Small head or non-128-multiple D: a standalone pallas_call is pure fixed
        # overhead — let XLA fuse the dot (review item #6).
        y = jnp.dot(x.astype(jnp.bfloat16), w_prepped,
                    preferred_element_type=jnp.float32) + b_prepped
        y = jnp.transpose(y[:, :OD].reshape(B, 5, output_dim), (1, 0, 2))  # [5, B, D]
    else:
        cost = pl.CostEstimate(
            flops=2 * B * F * OD_pad,
            transcendentals=0,
            bytes_accessed=B * F * 4 + F * OD_pad * 2 + OD_pad * 4 + 5 * B * output_dim * 4,
        )
        y = pl.pallas_call(
            functools.partial(film_kernel, d=output_dim),
            out_shape=jax.ShapeDtypeStruct((5, B, output_dim), jnp.float32),
            grid_spec=pltpu.PrefetchScalarGridSpec(
                num_scalar_prefetch=0,
                grid=(1,),  # single step: whole problem fits VMEM on v5e/v6e/v7x
                in_specs=[
                    pl.BlockSpec((B, F), lambda i: (0, 0)),        # x, f32, cast in-kernel
                    pl.BlockSpec((F, OD_pad), lambda i: (0, 0)),   # full bf16 weight
                    pl.BlockSpec((1, OD_pad), lambda i: (0, 0)),   # bias
                ],
                out_specs=pl.BlockSpec((5, B, output_dim), lambda i: (0, 0, 0)),
            ),
            compiler_params=pltpu.CompilerParams(
                dimension_semantics=("arbitrary",),
                vmem_limit_bytes=16 * 1024 * 1024,  # working set ~1.5 MiB; safe everywhere
            ),
            cost_estimate=cost,
        )(x, w_prepped, b_prepped)

    # Glue is now only trailing expand_dims + a contiguous leading-axis split.
    y = y[..., None, None]                       # [5, B, D, 1, 1]
    return y[0:3], y[3:5]


def _torch_style_linear_init(key, out_features, in_features):
    # nn.Linear default: U(-1/sqrt(in), 1/sqrt(in)) for both weight and bias.
    kw, kb = jax.random.split(key)
    bound = 1.0 / jnp.sqrt(jnp.float32(in_features))
    w = jax.random.uniform(kw, (out_features, in_features), jnp.float32, -bound, bound)
    b = jax.random.uniform(kb, (out_features,), jnp.float32, -bound, bound)
    return w, b


if __name__ == "__main__":
    key = jax.random.PRNGKey(0)
    k_x, k_p = jax.random.split(key)

    B = 8             # >= 8 rows fills every sublane
    output_dim = 128  # D % 128 == 0 -> lane-dense grouped stores; 5*D = 640, no padding
    IN = 512          # fixed by the module

    x = jax.random.normal(k_x, (B, IN), dtype=jnp.float32)
    w, b = _torch_style_linear_init(k_p, 5 * output_dim, IN)       # torch layout [out, in]
    w_prepped, b_prepped = prepare_film_params(w, b, output_dim)    # one-time layout prep

    # Force the Pallas path here to exercise the kernel; production default falls back to
    # XLA below DEFAULT_MIN_PALLAS_WEIGHT_BYTES (review item #6).
    gamma, beta = cpx_film_forward(x, w_prepped, b_prepped, output_dim,
                                   min_pallas_weight_bytes=0)
    gamma = jax.block_until_ready(gamma)
    beta = jax.block_until_ready(beta)

    OD = 5 * output_dim
    assert gamma.shape == (3, B, output_dim, 1, 1)
    assert beta.shape == (2, B, output_dim, 1, 1)

    # (a) Tight check against a bf16-matched XLA reference (same grouped params).
    y_bf = jnp.dot(x.astype(jnp.bfloat16), w_prepped,
                   preferred_element_type=jnp.float32) + b_prepped
    y_bf = jnp.transpose(y_bf[:, :OD].reshape(B, 5, output_dim), (1, 0, 2))[..., None, None]
    assert jnp.allclose(gamma, y_bf[0:3], atol=1e-4, rtol=1e-4)
    assert jnp.allclose(beta, y_bf[3:5], atol=1e-4, rtol=1e-4)

    # (b) Loose check against the full-f32 PyTorch-semantics reference (bf16 weights).
    y32 = x @ jnp.transpose(w) + b
    y32 = jnp.transpose(y32.reshape(B, output_dim, 5), (2, 0, 1))[..., None, None]
    assert jnp.allclose(gamma, y32[0:3], atol=3e-2, rtol=3e-2)
    assert jnp.allclose(beta, y32[3:5], atol=3e-2, rtol=3e-2)

    # (c) The XLA-fallback path (production default for small heads) must agree exactly.
    g_fb, b_fb = cpx_film_forward(x, w_prepped, b_prepped, output_dim,
                                  min_pallas_weight_bytes=1 << 30)
    assert jnp.allclose(gamma, jax.block_until_ready(g_fb), atol=1e-4, rtol=1e-4)
    assert jnp.allclose(beta, jax.block_until_ready(b_fb), atol=1e-4, rtol=1e-4)

    print("KERNEL_OK")
</pallas_src>

<mosaic_0001>
module attributes {stable_mosaic.version = 11 : i64} {
  func.func @film_kernel(%arg0: i32, %arg1: memref<8x512xf32, #tpu.memory_space<vmem>>, %arg2: memref<512x640xbf16, #tpu.memory_space<vmem>>, %arg3: memref<1x640xf32, #tpu.memory_space<vmem>>, %arg4: memref<5x8x128xf32, #tpu.memory_space<vmem>>) attributes {dimension_semantics = [#tpu.dimension_semantics<arbitrary>], iteration_bounds = array<i64: 1>, scalar_prefetch = 0 : i64, scratch_operands = 0 : i64, tpu.core_type = #tpu.core_type<tc>, window_params = [{pipeline_mode = #tpu.pipeline_mode<synchronous>, transform_indices = @transform_0, window_bounds = array<i64: 8, 512>}, {pipeline_mode = #tpu.pipeline_mode<synchronous>, transform_indices = @transform_1, window_bounds = array<i64: 512, 640>}, {pipeline_mode = #tpu.pipeline_mode<synchronous>, transform_indices = @transform_2, window_bounds = array<i64: 1, 640>}, {pipeline_mode = #tpu.pipeline_mode<synchronous>, transform_indices = @transform_3, window_bounds = array<i64: 5, 8, 128>}]} {
    %c0 = arith.constant 0 : index
    %c0_0 = arith.constant 0 : index
    %0 = vector.load %arg1[%c0, %c0_0] : memref<8x512xf32, #tpu.memory_space<vmem>>, vector<8x512xf32>
    %1 = arith.truncf %0 : vector<8x512xf32> to vector<8x512xbf16>
    %c0_1 = arith.constant 0 : index
    %c0_2 = arith.constant 0 : index
    %2 = vector.load %arg2[%c0_1, %c0_2] : memref<512x640xbf16, #tpu.memory_space<vmem>>, vector<512x640xbf16>
    %cst = arith.constant dense<0.000000e+00> : vector<8x640xf32>
    %3 = tpu.matmul %1, %2, %cst {dimension_numbers = #tpu.dot_dimension_numbers<[1], [0], [0], [1], [0, 0, 1, 1], [], []>} : vector<8x512xbf16>, vector<512x640xbf16>, vector<8x640xf32> -> vector<8x640xf32>
    %c0_3 = arith.constant 0 : index
    %c0_4 = arith.constant 0 : index
    %4 = vector.load %arg3[%c0_3, %c0_4] : memref<1x640xf32, #tpu.memory_space<vmem>>, vector<1x640xf32>
    %5 = vector.broadcast %4 : vector<1x640xf32> to vector<8x640xf32>
    %6 = arith.addf %3, %5 : vector<8x640xf32>
    %7 = vector.extract_strided_slice %6 {offsets = [0, 0], sizes = [8, 128], strides = [1, 1]} : vector<8x640xf32> to vector<8x128xf32>
    %c0_5 = arith.constant 0 : index
    %c0_6 = arith.constant 0 : index
    %c0_7 = arith.constant 0 : index
    %8 = vector.load %arg4[%c0_5, %c0_6, %c0_7] : memref<5x8x128xf32, #tpu.memory_space<vmem>>, vector<1x8x128xf32>
    %9 = vector.shape_cast %8 : vector<1x8x128xf32> to vector<8x128xf32>
    %10 = vector.shape_cast %7 : vector<8x128xf32> to vector<1x8x128xf32>
    tpu.vector_store %arg4[%c0_5, %c0_6, %c0_7], %10 {strides = array<i32>} : memref<5x8x128xf32, #tpu.memory_space<vmem>>, vector<1x8x128xf32>,
    %11 = vector.extract_strided_slice %6 {offsets = [0, 128], sizes = [8, 128], strides = [1, 1]} : vector<8x640xf32> to vector<8x128xf32>
    %c1 = arith.constant 1 : index
    %c0_8 = arith.constant 0 : index
    %c0_9 = arith.constant 0 : index
    %12 = vector.load %arg4[%c1, %c0_8, %c0_9] : memref<5x8x128xf32, #tpu.memory_space<vmem>>, vector<1x8x128xf32>
    %13 = vector.shape_cast %12 : vector<1x8x128xf32> to vector<8x128xf32>
    %14 = vector.shape_cast %11 : vector<8x128xf32> to vector<1x8x128xf32>
    tpu.vector_store %arg4[%c1, %c0_8, %c0_9], %14 {strides = array<i32>} : memref<5x8x128xf32, #tpu.memory_space<vmem>>, vector<1x8x128xf32>,
    %15 = vector.extract_strided_slice %6 {offsets = [0, 256], sizes = [8, 128], strides = [1, 1]} : vector<8x640xf32> to vector<8x128xf32>
    %c2 = arith.constant 2 : index
    %c0_10 = arith.constant 0 : index
    %c0_11 = arith.constant 0 : index
    %16 = vector.load %arg4[%c2, %c0_10, %c0_11] : memref<5x8x128xf32, #tpu.memory_space<vmem>>, vector<1x8x128xf32>
    %17 = vector.shape_cast %16 : vector<1x8x128xf32> to vector<8x128xf32>
    %18 = vector.shape_cast %15 : vector<8x128xf32> to vector<1x8x128xf32>
    tpu.vector_store %arg4[%c2, %c0_10, %c0_11], %18 {strides = array<i32>} : memref<5x8x128xf32, #tpu.memory_space<vmem>>, vector<1x8x128xf32>,
    %19 = vector.extract_strided_slice %6 {offsets = [0, 384], sizes = [8, 128], strides = [1, 1]} : vector<8x640xf32> to vector<8x128xf32>
    %c3 = arith.constant 3 : index
    %c0_12 = arith.constant 0 : index
    %c0_13 = arith.constant 0 : index
    %20 = vector.load %arg4[%c3, %c0_12, %c0_13] : memref<5x8x128xf32, #tpu.memory_space<vmem>>, vector<1x8x128xf32>
    %21 = vector.shape_cast %20 : vector<1x8x128xf32> to vector<8x128xf32>
    %22 = vector.shape_cast %19 : vector<8x128xf32> to vector<1x8x128xf32>
    tpu.vector_store %arg4[%c3, %c0_12, %c0_13], %22 {strides = array<i32>} : memref<5x8x128xf32, #tpu.memory_space<vmem>>, vector<1x8x128xf32>,
    %23 = vector.extract_strided_slice %6 {offsets = [0, 512], sizes = [8, 128], strides = [1, 1]} : vector<8x640xf32> to vector<8x128xf32>
    %c4 = arith.constant 4 : index
    %c0_14 = arith.constant 0 : index
    %c0_15 = arith.constant 0 : index
    %24 = vector.load %arg4[%c4, %c0_14, %c0_15] : memref<5x8x128xf32, #tpu.memory_space<vmem>>, vector<1x8x128xf32>
    %25 = vector.shape_cast %24 : vector<1x8x128xf32> to vector<8x128xf32>
    %26 = vector.shape_cast %23 : vector<8x128xf32> to vector<1x8x128xf32>
    tpu.vector_store %arg4[%c4, %c0_14, %c0_15], %26 {strides = array<i32>} : memref<5x8x128xf32, #tpu.memory_space<vmem>>, vector<1x8x128xf32>,
    return
  }
  func.func @transform_0(%arg0: i32) -> (i32, i32) {
    %c0_i32 = arith.constant 0 : i32
    %c0_i32_0 = arith.constant 0 : i32
    %c0_i32_1 = arith.constant 0 : i32
    return %c0_i32, %c0_i32_0 : i32, i32
  }
  func.func @transform_1(%arg0: i32) -> (i32, i32) {
    %c0_i32 = arith.constant 0 : i32
    %c0_i32_0 = arith.constant 0 : i32
    %c0_i32_1 = arith.constant 0 : i32
    return %c0_i32, %c0_i32_0 : i32, i32
  }
  func.func @transform_2(%arg0: i32) -> (i32, i32) {
    %c0_i32 = arith.constant 0 : i32
    %c0_i32_0 = arith.constant 0 : i32
    %c0_i32_1 = arith.constant 0 : i32
    return %c0_i32, %c0_i32_0 : i32, i32
  }
  func.func @transform_3(%arg0: i32) -> (i32, i32, i32) {
    %c0_i32 = arith.constant 0 : i32
    %c0_i32_0 = arith.constant 0 : i32
    %c0_i32_1 = arith.constant 0 : i32
    %c0_i32_2 = arith.constant 0 : i32
    return %c0_i32, %c0_i32_0, %c0_i32_1 : i32, i32, i32
  }
}

</mosaic_0001>

<bundles_post_ra>
// kernel: cpx_film_forward.1
= control target key start
LH: loop header
LB: loop body
LE: loop exit
PB: predicated region body
PF: predicated region fallthrough
CT: control target
= control target key end

     0   :  { %8 = vsyncpa [#allocation3], 0  ;;  %s1948_s0 = inlined_call_operand.hbm [shape: f32[8,512], index: 0, kind: input, shape index: {}]   ;;  %s1949_s1 = inlined_call_operand.hbm [shape: bf16[512,640], index: 1, kind: input, shape index: {}]   ;;  %s1950_s2 = inlined_call_operand.vmem [shape: f32[1,640], index: 2, kind: input, shape index: {}]   ;;  %s1951_s3 = inlined_call_operand.vmem [shape: f32[5,8,128], index: 3, kind: output, shape index: {}]  }
   0x1   :  { %9 = vsyncpa [#allocation5], 0  ;;  %s1855_s12 = smov [#allocation2]   ;;  %s1856_s14 = smov [#allocation4]  }
   0x2   :  { %s16_s13 = sshll.u32 %s1855_s12, 4  ;;  %s25_s15 = sshll.u32 %s1856_s14, 4  ;;  %s17_s13 = int_to_ptr.vmem [resolvable:$true] %s16_s13  ;;  %s1879_s15 = int_to_ptr.vmem [resolvable:$true] %s25_s15 }
   0x3   :  { %s1807_s18 = scalar_lea.hbm %s1948_s0, 512 }
   0x4   :  { %p1808_p0 = scmp.ne.s32.totalorder %s1948_s0, %s1807_s18  ;;  %p1811_p1 = scmp.lt.u32.totalorder %s1807_s18, %s1948_s0 }
   0x6   :  { %p1813_p2 = pnand %p1811_p1, %p1808_p0 }
   0x8   :  { %1816 = shalt.err (!%p1813_p2)
}
   0x9   :  { %s1817_s23 = scalar_lea.vmem %s17_s13, 512  ;;  %p1822_p4 = scmp.lt.s32.totalorder %s17_s13, %s17_s13 }
   0xa   :  { %p1818_p3 = scmp.ne.s32.totalorder %s17_s13, %s1817_s23  ;;  %p1823_p5 = scmp.lt.s32.totalorder %s1817_s23, %s1817_s23 }
   0xc   :  { %p1824_p6 = por %p1823_p5, %p1822_p4 }
   0xe   :  { %p1825_p7 = pnand %p1824_p6, %p1818_p3 }
  0x10   :  { %1828 = shalt.err (!%p1825_p7)
}
  0x11   :  { %19 = dma.hbm_to_vmem [thread:$0]  %s1948_s0, 512, %s17_s13, [#allocation3]  }
  0x12   :  { %s1829_s28 = scalar_lea.hbm %s1949_s1, 20480 }
  0x13   :  { %p1830_p8 = scmp.ne.s32.totalorder %s1949_s1, %s1829_s28  ;;  %p1833_p9 = scmp.lt.u32.totalorder %s1829_s28, %s1949_s1 }
  0x15   :  { %p1835_p10 = pnand %p1833_p9, %p1830_p8 }
  0x17   :  { %1838 = shalt.err (!%p1835_p10)
}
  0x18   :  { %s1839_s6 = scalar_lea.vmem %s1879_s15, 20480  ;;  %p1844_p12 = scmp.lt.s32.totalorder %s1879_s15, %s1879_s15 }
  0x19   :  { %p1840_p11 = scmp.ne.s32.totalorder %s1879_s15, %s1839_s6  ;;  %p1845_p13 = scmp.lt.s32.totalorder %s1839_s6, %s1839_s6 }
  0x1b   :  { %p1846_p0 = por %p1845_p13, %p1844_p12 }
  0x1d   :  { %p1847_p1 = pnand %p1846_p0, %p1840_p11 }
  0x1f   :  { %1850 = shalt.err (!%p1847_p1)
}
  0x20   :  { %s1857_s0 = smov 320   ;;  %s1858_s7 = smov 20  }
  0x21   :  { %31 = dma.hbm_to_vmem [thread:$0]  %s1949_s1, 20480, %s1879_s15, [#allocation5], %s1857_s0, %s1857_s0, %s1858_s7  }
  0x22   :  { %1851 = dma.done.wait [#allocation3], 512  }
  0x23   :  { %1852 = vsyncadd [#allocation3], 4294966784 }
  0x24   :  { %1853 = dma.done.wait [#allocation5], 20480  }
  0x25   :  { %1854 = vsyncadd [#allocation5], 4294946816  ;;  %v1583_v0 = vld [vmem:[#allocation4 + $0x4] ss:$20 sps:$4 sm:$0xff]   ;;  %v1585_v1 = vld [vmem:[#allocation4 + $0xc] ss:$20 sps:$4 sm:$0xff]  }
  0x26   :  { %1100 = vmatprep.subr.bf16.mxu0 %v1583_v0  ;;  %v1587_v2 = vld [vmem:[#allocation4] ss:$20 sps:$4 sm:$0xff]   ;;  %v1588_v3 = vld [vmem:[#allocation4 + $0x8] ss:$20 sps:$4 sm:$0xff]   ;;  %1182 = vmatprep.subr.bf16.mxu1 %v1585_v1  ;;  %v1594_v7 = vld [vmem:[#allocation4 + $0x30] ss:$20 sps:$4 sm:$0xff]  }
  0x27   :  { %v1589_v4 = vld [vmem:[#allocation4 + $0x2c] ss:$20 sps:$4 sm:$0xff]   ;;  %1101 = vmatpush1.bf16.msra.mxu0 %v1587_v2  ;;  %1183 = vmatpush1.bf16.msra.mxu1 %v1588_v3  ;;  %v1591_v5 = vld [vmem:[#allocation4 + $0x34] ss:$20 sps:$4 sm:$0xff]   ;;  %v1597_v9 = vld [vmem:[#allocation4 + $0x5c] ss:$20 sps:$4 sm:$0xff]  }
  0x28   :  { %v1593_v6 = vld [vmem:[#allocation4 + $0x28] ss:$20 sps:$4 sm:$0xff]   ;;  %1102 = vmatprep.subr.bf16.mxu0 %v1589_v4  ;;  %1184 = vmatprep.subr.bf16.mxu1 %v1591_v5  ;;  %v1599_v10 = vld [vmem:[#allocation4 + $0x50] ss:$20 sps:$4 sm:$0xff]   ;;  %v1600_v11 = vld [vmem:[#allocation4 + $0x58] ss:$20 sps:$4 sm:$0xff]  }
  0x29   :  { %v1595_v8 = vld [vmem:[#allocation4 + $0x54] ss:$20 sps:$4 sm:$0xff]   ;;  %v1601_v12 = vld [vmem:[#allocation4 + $0x7c] ss:$20 sps:$4 sm:$0xff]   ;;  %v1603_v13 = vld [vmem:[#allocation4 + $0x84] ss:$20 sps:$4 sm:$0xff]  }
  0x2a   :  { %v1605_v14 = vld [vmem:[#allocation4 + $0x78] ss:$20 sps:$4 sm:$0xff]   ;;  %v1606_v15 = vld [vmem:[#allocation4 + $0x80] ss:$20 sps:$4 sm:$0xff]   ;;  %v1612_v19 = vld [vmem:[#allocation4 + $0xa8] ss:$20 sps:$4 sm:$0xff]  }
  0x2b   :  { %1103 = vmatpush1.bf16.msra.mxu0 %v1593_v6  ;;  %1185 = vmatpush1.bf16.msra.mxu1 %v1594_v7  ;;  %v1607_v16 = vld [vmem:[#allocation4 + $0xa4] ss:$20 sps:$4 sm:$0xff]   ;;  %v1609_v17 = vld [vmem:[#allocation4 + $0xac] ss:$20 sps:$4 sm:$0xff]   ;;  %v1615_v21 = vld [vmem:[#allocation4 + $0xd4] ss:$20 sps:$4 sm:$0xff]  }
  0x2c   :  { %1104 = vmatprep.subr.bf16.mxu0 %v1595_v8  ;;  %1186 = vmatprep.subr.bf16.mxu1 %v1597_v9  ;;  %v1611_v18 = vld [vmem:[#allocation4 + $0xa0] ss:$20 sps:$4 sm:$0xff]   ;;  %v1617_v22 = vld [vmem:[#allocation4 + $0xc8] ss:$20 sps:$4 sm:$0xff]   ;;  %v1618_v23 = vld [vmem:[#allocation4 + $0xd0] ss:$20 sps:$4 sm:$0xff]  }
  0x2d   :  { %v1613_v20 = vld [vmem:[#allocation4 + $0xcc] ss:$20 sps:$4 sm:$0xff]   ;;  %v1619_v24 = vld [vmem:[#allocation4 + $0xf4] ss:$20 sps:$4 sm:$0xff]   ;;  %v1621_v25 = vld [vmem:[#allocation4 + $0xfc] ss:$20 sps:$4 sm:$0xff]  }
  0x2e   :  { %v1623_v26 = vld [vmem:[#allocation4 + $0xf0] ss:$20 sps:$4 sm:$0xff]   ;;  %v1624_v27 = vld [vmem:[#allocation4 + $0xf8] ss:$20 sps:$4 sm:$0xff]   ;;  %v1630_v31 = vld [vmem:[#allocation4 + $0x120] ss:$20 sps:$4 sm:$0xff]  }
  0x2f   :  { %1105 = vmatpush1.bf16.msra.mxu0 %v1599_v10  ;;  %1187 = vmatpush1.bf16.msra.mxu1 %v1600_v11  ;;  %v1625_v28 = vld [vmem:[#allocation4 + $0x11c] ss:$20 sps:$4 sm:$0xff]   ;;  %v1627_v29 = vld [vmem:[#allocation4 + $0x124] ss:$20 sps:$4 sm:$0xff]   ;;  %v1633_v33 = vld [vmem:[#allocation4 + $0x14c] ss:$20 sps:$4 sm:$0xff]  }
  0x30   :  { %1106 = vmatprep.subr.bf16.mxu0 %v1601_v12  ;;  %1188 = vmatprep.subr.bf16.mxu1 %v1603_v13  ;;  %v1629_v30 = vld [vmem:[#allocation4 + $0x118] ss:$20 sps:$4 sm:$0xff]   ;;  %v1635_v34 = vld [vmem:[#allocation4 + $0x140] ss:$20 sps:$4 sm:$0xff]   ;;  %v1636_v35 = vld [vmem:[#allocation4 + $0x148] ss:$20 sps:$4 sm:$0xff]  }
  0x31   :  { %v1631_v32 = vld [vmem:[#allocation4 + $0x144] ss:$20 sps:$4 sm:$0xff]   ;;  %v1637_v36 = vld [vmem:[#allocation4 + $0x16c] ss:$20 sps:$4 sm:$0xff]   ;;  %v1639_v37 = vld [vmem:[#allocation4 + $0x174] ss:$20 sps:$4 sm:$0xff]  }
  0x32   :  { %v1641_v38 = vld [vmem:[#allocation4 + $0x168] ss:$20 sps:$4 sm:$0xff]   ;;  %v1642_v39 = vld [vmem:[#allocation4 + $0x170] ss:$20 sps:$4 sm:$0xff]   ;;  %v1648_v43 = vld [vmem:[#allocation4 + $0x198] ss:$20 sps:$4 sm:$0xff]  }
  0x33   :  { %1107 = vmatpush1.bf16.msra.mxu0 %v1605_v14  ;;  %1189 = vmatpush1.bf16.msra.mxu1 %v1606_v15  ;;  %v1643_v40 = vld [vmem:[#allocation4 + $0x194] ss:$20 sps:$4 sm:$0xff]   ;;  %v1645_v41 = vld [vmem:[#allocation4 + $0x19c] ss:$20 sps:$4 sm:$0xff]   ;;  %v1651_v45 = vld [vmem:[#allocation4 + $0x1c4] ss:$20 sps:$4 sm:$0xff]  }
  0x34   :  { %1108 = vmatprep.subr.bf16.mxu0 %v1607_v16  ;;  %1190 = vmatprep.subr.bf16.mxu1 %v1609_v17  ;;  %v1647_v42 = vld [vmem:[#allocation4 + $0x190] ss:$20 sps:$4 sm:$0xff]   ;;  %v42_v46 = vld [vmem:[#allocation2 + $0x8] sm:$0xff]  ;;  %v1654_v49 = vld [vmem:[#allocation4 + $0x1c0] ss:$20 sps:$4 sm:$0xff]  }
  0x35   :  { %v1649_v44 = vld [vmem:[#allocation4 + $0x1bc] ss:$20 sps:$4 sm:$0xff]   ;;  %v1653_v47 = vld [vmem:[#allocation4 + $0x1b8] ss:$20 sps:$4 sm:$0xff]   ;;  %v1910_v48 = vpack.c.bf16 %v42_v46, %v42_v46  ;;  %v1659_v52 = vld [vmem:[#allocation4 + $0x1e0] ss:$20 sps:$4 sm:$0xff]  }
  0x36   :  { %v1655_v50 = vld [vmem:[#allocation4 + $0x1e4] ss:$20 sps:$4 sm:$0xff]   ;;  %v1657_v51 = vld [vmem:[#allocation4 + $0x1ec] ss:$20 sps:$4 sm:$0xff]   ;;  %v1660_v53 = vld [vmem:[#allocation4 + $0x1e8] ss:$20 sps:$4 sm:$0xff]  }
  0x37   :  { %1109 = vmatpush1.bf16.msra.mxu0 %v1611_v18  ;;  %1191 = vmatpush1.bf16.msra.mxu1 %v1612_v19  ;;  %v1661_v54 = vld [vmem:[#allocation4 + $0x20c] ss:$20 sps:$4 sm:$0xff]   ;;  %v1663_v55 = vld [vmem:[#allocation4 + $0x214] ss:$20 sps:$4 sm:$0xff]   ;;  %v1666_v57 = vld [vmem:[#allocation4 + $0x210] ss:$20 sps:$4 sm:$0xff]  }
  0x38   :  { %1110 = vmatprep.subr.bf16.mxu0 %v1613_v20  ;;  %1192 = vmatprep.subr.bf16.mxu1 %v1615_v21  ;;  %v1665_v56 = vld [vmem:[#allocation4 + $0x208] ss:$20 sps:$4 sm:$0xff]   ;;  %v1671_v60 = vld [vmem:[#allocation4 + $0x230] ss:$20 sps:$4 sm:$0xff]   ;;  %v1672_v61 = vld [vmem:[#allocation4 + $0x238] ss:$20 sps:$4 sm:$0xff]  }
  0x39   :  { %1132 = vmatprep.mubr.bf16.mxu0 %v1910_v48  ;;  %1214 = vmatprep.mubr.bf16.mxu1 %v1910_v48  ;;  %v1667_v58 = vld [vmem:[#allocation4 + $0x234] ss:$20 sps:$4 sm:$0xff]   ;;  %v1669_v59 = vld [vmem:[#allocation4 + $0x23c] ss:$20 sps:$4 sm:$0xff]   ;;  %v1675_v63 = vld [vmem:[#allocation4 + $0x264] ss:$20 sps:$4 sm:$0xff]  }
  0x3a   :  { %v1673_v62 = vld [vmem:[#allocation4 + $0x25c] ss:$20 sps:$4 sm:$0xff]   ;;  %v1677_v0 = vld [vmem:[#allocation4 + $0x258] ss:$20 sps:$4 sm:$0xff]   ;;  %v1678_v1 = vld [vmem:[#allocation4 + $0x260] ss:$20 sps:$4 sm:$0xff]  }
  0x3b   :  { %1111 = vmatpush1.bf16.msra.mxu0 %v1617_v22  ;;  %1193 = vmatpush1.bf16.msra.mxu1 %v1618_v23  ;;  %v41_v2 = vld [vmem:[#allocation2] sm:$0xff]  ;;  %v1682_v7 = vld [vmem:[#allocation4 + $0x288] ss:$20 sps:$4 sm:$0xff]   ;;  %v1694_v15 = vld [vmem:[#allocation4 + $0x2d8] ss:$20 sps:$4 sm:$0xff]  }
  0x3c   :  { %1112 = vmatprep.subr.bf16.mxu0 %v1619_v24  ;;  %1194 = vmatprep.subr.bf16.mxu1 %v1621_v25  ;;  %v1681_v3 = vld [vmem:[#allocation4 + $0x284] ss:$20 sps:$4 sm:$0xff]   ;;  %v1684_v4 = vld [vmem:[#allocation4 + $0x28c] ss:$20 sps:$4 sm:$0xff]   ;;  %v1914_v5 = vpack.c.bf16 %v41_v2, %v41_v2  ;;  %v1690_v9 = vld [vmem:[#allocation4 + $0x2b4] ss:$20 sps:$4 sm:$0xff]  }
  0x3d   :  { %v1679_v6 = vld [vmem:[#allocation4 + $0x280] ss:$20 sps:$4 sm:$0xff]   ;;  %v1685_v10 = vld [vmem:[#allocation4 + $0x2a8] ss:$20 sps:$4 sm:$0xff]   ;;  %v1688_v11 = vld [vmem:[#allocation4 + $0x2b0] ss:$20 sps:$4 sm:$0xff]  }
  0x3e   :  { %v1687_v8 = vld [vmem:[#allocation4 + $0x2ac] ss:$20 sps:$4 sm:$0xff]   ;;  %v1693_v12 = vld [vmem:[#allocation4 + $0x2d4] ss:$20 sps:$4 sm:$0xff]   ;;  %v1696_v13 = vld [vmem:[#allocation4 + $0x2dc] ss:$20 sps:$4 sm:$0xff]  }
  0x3f   :  { %1113 = vmatpush1.bf16.msra.mxu0 %v1623_v26  ;;  %1195 = vmatpush1.bf16.msra.mxu1 %v1624_v27  ;;  %v1691_v14 = vld [vmem:[#allocation4 + $0x2d0] ss:$20 sps:$4 sm:$0xff]   ;;  %v1697_v18 = vld [vmem:[#allocation4 + $0x2f8] ss:$20 sps:$4 sm:$0xff]   ;;  %v1700_v19 = vld [vmem:[#allocation4 + $0x300] ss:$20 sps:$4 sm:$0xff]  }
  0x40   :  { %1114 = vmatprep.subr.bf16.mxu0 %v1625_v28  ;;  %1196 = vmatprep.subr.bf16.mxu1 %v1627_v29  ;;  %v1699_v16 = vld [vmem:[#allocation4 + $0x2fc] ss:$20 sps:$4 sm:$0xff]   ;;  %v1702_v17 = vld [vmem:[#allocation4 + $0x304] ss:$20 sps:$4 sm:$0xff]   ;;  %v1708_v21 = vld [vmem:[#allocation4 + $0x32c] ss:$20 sps:$4 sm:$0xff]  }
  0x41   :  { %v1705_v20 = vld [vmem:[#allocation4 + $0x324] ss:$20 sps:$4 sm:$0xff]   ;;  %v1703_v22 = vld [vmem:[#allocation4 + $0x320] ss:$20 sps:$4 sm:$0xff]   ;;  %v1706_v23 = vld [vmem:[#allocation4 + $0x328] ss:$20 sps:$4 sm:$0xff]  }
  0x42   :  { %v1711_v24 = vld [vmem:[#allocation4 + $0x34c] ss:$20 sps:$4 sm:$0xff]   ;;  %v1714_v25 = vld [vmem:[#allocation4 + $0x354] ss:$20 sps:$4 sm:$0xff]   ;;  %v1712_v27 = vld [vmem:[#allocation4 + $0x350] ss:$20 sps:$4 sm:$0xff]  }
  0x43   :  { %1115 = vmatpush1.bf16.msra.mxu0 %v1629_v30  ;;  %1197 = vmatpush1.bf16.msra.mxu1 %v1630_v31  ;;  %v1709_v26 = vld [vmem:[#allocation4 + $0x348] ss:$20 sps:$4 sm:$0xff]   ;;  %v1715_v30 = vld [vmem:[#allocation4 + $0x370] ss:$20 sps:$4 sm:$0xff]   ;;  %v1766_v2 = vld [vmem:[#allocation4 + $0x4b8] ss:$20 sps:$4 sm:$0xff]  }
  0x44   :  { %1116 = vmatprep.subr.bf16.mxu0 %v1631_v32  ;;  %1198 = vmatprep.subr.bf16.mxu1 %v1633_v33  ;;  %v1717_v28 = vld [vmem:[#allocation4 + $0x374] ss:$20 sps:$4 sm:$0xff]   ;;  %v1720_v29 = vld [vmem:[#allocation4 + $0x37c] ss:$20 sps:$4 sm:$0xff]   ;;  %v1718_v32 = vld [vmem:[#allocation4 + $0x378] ss:$20 sps:$4 sm:$0xff]  }
  0x45   :  { %v44_v31 = vld [vmem:[#allocation2 + $0x18] sm:$0xff]  ;;  %v1741_v46 = vld [vmem:[#allocation4 + $0x414] ss:$20 sps:$4 sm:$0xff]  }
  0x46   :  { %v1918_v33 = vpack.c.bf16 %v44_v31, %v44_v31  ;;  %v1797_v31 = vld [vmem:[#allocation4 + $0xd8] ss:$20 sps:$4 sm:$0xff]  }
  0x47   :  { %1117 = vmatpush1.bf16.msra.mxu0 %v1635_v34  ;;  %1199 = vmatpush1.bf16.msra.mxu1 %v1636_v35  ;;  %v1723_v34 = vld [vmem:[#allocation4 + $0x39c] ss:$20 sps:$4 sm:$0xff]   ;;  %v1726_v35 = vld [vmem:[#allocation4 + $0x3a4] ss:$20 sps:$4 sm:$0xff]  }
  0x48   :  { %1118 = vmatprep.subr.bf16.mxu0 %v1637_v36  ;;  %1200 = vmatprep.subr.bf16.mxu1 %v1639_v37  ;;  %v1721_v36 = vld [vmem:[#allocation4 + $0x398] ss:$20 sps:$4 sm:$0xff]   ;;  %v1724_v37 = vld [vmem:[#allocation4 + $0x3a0] ss:$20 sps:$4 sm:$0xff]  }
  0x4b   :  { %1119 = vmatpush1.bf16.msra.mxu0 %v1641_v38  ;;  %1201 = vmatpush1.bf16.msra.mxu1 %v1642_v39  ;;  %v1729_v38 = vld [vmem:[#allocation4 + $0x3c4] ss:$20 sps:$4 sm:$0xff]   ;;  %v1732_v39 = vld [vmem:[#allocation4 + $0x3cc] ss:$20 sps:$4 sm:$0xff]  }
  0x4c   :  { %1120 = vmatprep.subr.bf16.mxu0 %v1643_v40  ;;  %1202 = vmatprep.subr.bf16.mxu1 %v1645_v41  ;;  %v1727_v40 = vld [vmem:[#allocation4 + $0x3c0] ss:$20 sps:$4 sm:$0xff]   ;;  %v1730_v41 = vld [vmem:[#allocation4 + $0x3c8] ss:$20 sps:$4 sm:$0xff]  }
  0x4f   :  { %1121 = vmatpush1.bf16.msra.mxu0 %v1647_v42  ;;  %1203 = vmatpush1.bf16.msra.mxu1 %v1648_v43  ;;  %v1735_v42 = vld [vmem:[#allocation4 + $0x3ec] ss:$20 sps:$4 sm:$0xff]   ;;  %v1738_v43 = vld [vmem:[#allocation4 + $0x3f4] ss:$20 sps:$4 sm:$0xff]  }
  0x50   :  { %1122 = vmatprep.subr.bf16.mxu0 %v1649_v44  ;;  %1204 = vmatprep.subr.bf16.mxu1 %v1651_v45  ;;  %v1733_v44 = vld [vmem:[#allocation4 + $0x3e8] ss:$20 sps:$4 sm:$0xff]   ;;  %v1736_v45 = vld [vmem:[#allocation4 + $0x3f0] ss:$20 sps:$4 sm:$0xff]  }
  0x53   :  { %1123 = vmatpush1.bf16.msra.mxu0 %v1653_v47  ;;  %1205 = vmatpush1.bf16.msra.mxu1 %v1654_v49  ;;  %v1744_v47 = vld [vmem:[#allocation4 + $0x41c] ss:$20 sps:$4 sm:$0xff]  }
  0x54   :  { %1124 = vmatprep.subr.bf16.mxu0 %v1655_v50  ;;  %1206 = vmatprep.subr.bf16.mxu1 %v1657_v51  ;;  %v1739_v49 = vld [vmem:[#allocation4 + $0x410] ss:$20 sps:$4 sm:$0xff]   ;;  %v1742_v50 = vld [vmem:[#allocation4 + $0x418] ss:$20 sps:$4 sm:$0xff]  }
  0x55   :  { %v1747_v51 = vld [vmem:[#allocation4 + $0x43c] ss:$20 sps:$4 sm:$0xff]  }
  0x57   :  { %1125 = vmatpush1.bf16.msra.mxu0 %v1659_v52  ;;  %1207 = vmatpush1.bf16.msra.mxu1 %v1660_v53  ;;  %v1750_v52 = vld [vmem:[#allocation4 + $0x444] ss:$20 sps:$4 sm:$0xff]  }
  0x58   :  { %1126 = vmatprep.subr.bf16.mxu0 %v1661_v54  ;;  %1208 = vmatprep.subr.bf16.mxu1 %v1663_v55  ;;  %v1745_v53 = vld [vmem:[#allocation4 + $0x438] ss:$20 sps:$4 sm:$0xff]   ;;  %v1748_v54 = vld [vmem:[#allocation4 + $0x440] ss:$20 sps:$4 sm:$0xff]  }
  0x59   :  { %v1753_v55 = vld [vmem:[#allocation4 + $0x464] ss:$20 sps:$4 sm:$0xff]  }
  0x5b   :  { %1127 = vmatpush1.bf16.msra.mxu0 %v1665_v56  ;;  %1209 = vmatpush1.bf16.msra.mxu1 %v1666_v57  ;;  %v1756_v56 = vld [vmem:[#allocation4 + $0x46c] ss:$20 sps:$4 sm:$0xff]  }
  0x5c   :  { %1128 = vmatprep.subr.bf16.mxu0 %v1667_v58  ;;  %1210 = vmatprep.subr.bf16.mxu1 %v1669_v59  ;;  %v1751_v57 = vld [vmem:[#allocation4 + $0x460] ss:$20 sps:$4 sm:$0xff]   ;;  %v1754_v58 = vld [vmem:[#allocation4 + $0x468] ss:$20 sps:$4 sm:$0xff]  }
  0x5d   :  { %v1759_v59 = vld [vmem:[#allocation4 + $0x48c] ss:$20 sps:$4 sm:$0xff]  }
  0x5f   :  { %1129 = vmatpush1.bf16.msra.mxu0 %v1671_v60  ;;  %1211 = vmatpush1.bf16.msra.mxu1 %v1672_v61  ;;  %v1762_v60 = vld [vmem:[#allocation4 + $0x494] ss:$20 sps:$4 sm:$0xff]  }
  0x60   :  { %1130 = vmatprep.subr.bf16.mxu0 %v1673_v62  ;;  %1212 = vmatprep.subr.bf16.mxu1 %v1675_v63  ;;  %v1757_v61 = vld [vmem:[#allocation4 + $0x488] ss:$20 sps:$4 sm:$0xff]   ;;  %v1760_v62 = vld [vmem:[#allocation4 + $0x490] ss:$20 sps:$4 sm:$0xff]  }
  0x61   :  { %v1765_v63 = vld [vmem:[#allocation4 + $0x4b4] ss:$20 sps:$4 sm:$0xff]  }
  0x63   :  { %1131 = vmatpush1.bf16.msra.mxu0 %v1677_v0  ;;  %1213 = vmatpush1.bf16.msra.mxu1 %v1678_v1  ;;  %v1768_v0 = vld [vmem:[#allocation4 + $0x4bc] ss:$20 sps:$4 sm:$0xff]  }
  0x64   :  { %1141 = vmatprep.subr.bf16.mxu0 %v1681_v3  ;;  %1223 = vmatprep.subr.bf16.mxu1 %v1684_v4  ;;  %v1763_v1 = vld [vmem:[#allocation4 + $0x4b0] ss:$20 sps:$4 sm:$0xff]  }
  0x65   :  { %v1771_v3 = vld [vmem:[#allocation4 + $0x4dc] ss:$20 sps:$4 sm:$0xff]   ;;  %v1774_v4 = vld [vmem:[#allocation4 + $0x4e4] ss:$20 sps:$4 sm:$0xff]  }
  0x66   :  { %1133 = vmatmul.mubr.bf16.vlgmr.msra.gmra.mrb[0].mxu0 %v1914_v5  ;;  %1215 = vmatmul.mubr.bf16.vlgmr.msra.gmra.mrb[0].mxu1 %v1914_v5 }
  0x67   :  { %1142 = vmatpush1.bf16.msra.mxu0 %v1679_v6  ;;  %1224 = vmatpush1.bf16.msra.mxu1 %v1682_v7  ;;  %v1769_v6 = vld [vmem:[#allocation4 + $0x4d8] ss:$20 sps:$4 sm:$0xff]   ;;  %v1772_v7 = vld [vmem:[#allocation4 + $0x4e0] ss:$20 sps:$4 sm:$0xff]  }
  0x68   :  { %1143 = vmatprep.subr.bf16.mxu0 %v1687_v8  ;;  %1225 = vmatprep.subr.bf16.mxu1 %v1690_v9  ;;  %v43_v8 = vld [vmem:[#allocation2 + $0x10] sm:$0xff] }
  0x69   :  { %1173 = vmatprep.mubr.bf16.mxu0 %v1918_v33  ;;  %1255 = vmatprep.mubr.bf16.mxu1 %v1918_v33  ;;  %v1775_v9 = vld [vmem:[#allocation4 + $0x150] ss:$20 sps:$4 sm:$0xff]  }
  0x6b   :  { %1144 = vmatpush1.bf16.msra.mxu0 %v1685_v10  ;;  %1226 = vmatpush1.bf16.msra.mxu1 %v1688_v11  ;;  %v1776_v10 = vld [vmem:[#allocation4 + $0x3d0] ss:$20 sps:$4 sm:$0xff]   ;;  %v1922_v11 = vpack.c.bf16 %v43_v8, %v43_v8 }
  0x6c   :  { %1145 = vmatprep.subr.bf16.mxu0 %v1693_v12  ;;  %1227 = vmatprep.subr.bf16.mxu1 %v1696_v13  ;;  %v1777_v12 = vld [vmem:[#allocation4 + $0x10] ss:$20 sps:$4 sm:$0xff]  }
  0x6d   :  { %v1778_v13 = vld [vmem:[#allocation4 + $0x290] ss:$20 sps:$4 sm:$0xff]  }
  0x6f   :  { %1146 = vmatpush1.bf16.msra.mxu0 %v1691_v14  ;;  %1228 = vmatpush1.bf16.msra.mxu1 %v1694_v15  ;;  %v1779_v14 = vld [vmem:[#allocation4 + $0x178] ss:$20 sps:$4 sm:$0xff]  }
  0x70   :  { %1147 = vmatprep.subr.bf16.mxu0 %v1699_v16  ;;  %1229 = vmatprep.subr.bf16.mxu1 %v1702_v17  ;;  %v1780_v15 = vld [vmem:[#allocation4 + $0x3f8] ss:$20 sps:$4 sm:$0xff]  }
  0x71   :  { %v1781_v16 = vld [vmem:[#allocation4 + $0x38] ss:$20 sps:$4 sm:$0xff]  }
  0x72   :  { %v1782_v17 = vld [vmem:[#allocation4 + $0x2b8] ss:$20 sps:$4 sm:$0xff]  }
  0x73   :  { %1148 = vmatpush1.bf16.msra.mxu0 %v1697_v18  ;;  %1230 = vmatpush1.bf16.msra.mxu1 %v1700_v19  ;;  %v1783_v18 = vld [vmem:[#allocation4 + $0x1a0] ss:$20 sps:$4 sm:$0xff]  }
  0x74   :  { %1149 = vmatprep.subr.bf16.mxu0 %v1705_v20  ;;  %1231 = vmatprep.subr.bf16.mxu1 %v1708_v21  ;;  %v1784_v19 = vld [vmem:[#allocation4 + $0x420] ss:$20 sps:$4 sm:$0xff]  }
  0x75   :  { %v1785_v20 = vld [vmem:[#allocation4 + $0x60] ss:$20 sps:$4 sm:$0xff]  }
  0x76   :  { %v1786_v21 = vld [vmem:[#allocation4 + $0x2e0] ss:$20 sps:$4 sm:$0xff]  }
  0x77   :  { %1150 = vmatpush1.bf16.msra.mxu0 %v1703_v22  ;;  %1232 = vmatpush1.bf16.msra.mxu1 %v1706_v23  ;;  %v1787_v22 = vld [vmem:[#allocation4 + $0x1c8] ss:$20 sps:$4 sm:$0xff]  }
  0x78   :  { %1151 = vmatprep.subr.bf16.mxu0 %v1711_v24  ;;  %1233 = vmatprep.subr.bf16.mxu1 %v1714_v25  ;;  %v1788_v23 = vld [vmem:[#allocation4 + $0x448] ss:$20 sps:$4 sm:$0xff]  }
  0x79   :  { %v1789_v24 = vld [vmem:[#allocation4 + $0x88] ss:$20 sps:$4 sm:$0xff]  }
  0x7a   :  { %v1790_v25 = vld [vmem:[#allocation4 + $0x308] ss:$20 sps:$4 sm:$0xff]  }
  0x7b   :  { %1152 = vmatpush1.bf16.msra.mxu0 %v1709_v26  ;;  %1234 = vmatpush1.bf16.msra.mxu1 %v1712_v27  ;;  %v1791_v26 = vld [vmem:[#allocation4 + $0x1f0] ss:$20 sps:$4 sm:$0xff]  }
  0x7c   :  { %1153 = vmatprep.subr.bf16.mxu0 %v1717_v28  ;;  %1235 = vmatprep.subr.bf16.mxu1 %v1720_v29  ;;  %v1792_v27 = vld [vmem:[#allocation4 + $0x470] ss:$20 sps:$4 sm:$0xff]   ;;  %v1795_v29 = vld [vmem:[#allocation4 + $0x218] ss:$20 sps:$4 sm:$0xff]  }
  0x7d   :  { %v1794_v28 = vld [vmem:[#allocation4 + $0x330] ss:$20 sps:$4 sm:$0xff]  }
  0x7f   :  { %1154 = vmatpush1.bf16.msra.mxu0 %v1715_v30  ;;  %1236 = vmatpush1.bf16.msra.mxu1 %v1718_v32  ;;  %v1796_v30 = vld [vmem:[#allocation4 + $0x498] ss:$20 sps:$4 sm:$0xff]  }
  0x80   :  { %1155 = vmatprep.subr.bf16.mxu0 %v1723_v34  ;;  %1237 = vmatprep.subr.bf16.mxu1 %v1726_v35  ;;  %v1798_v32 = vld [vmem:[#allocation4 + $0x358] ss:$20 sps:$4 sm:$0xff]   ;;  %v1800_v34 = vld [vmem:[#allocation4 + $0x4c0] ss:$20 sps:$4 sm:$0xff]  }
  0x81   :  { %v1801_v35 = vld [vmem:[#allocation4 + $0x100] ss:$20 sps:$4 sm:$0xff]  }
  0x83   :  { %1156 = vmatpush1.bf16.msra.mxu0 %v1721_v36  ;;  %1238 = vmatpush1.bf16.msra.mxu1 %v1724_v37  ;;  %v1802_v36 = vld [vmem:[#allocation4 + $0x380] ss:$20 sps:$4 sm:$0xff]   ;;  %v1803_v37 = vld [vmem:[#allocation4 + $0x268] ss:$20 sps:$4 sm:$0xff]  }
  0x84   :  { %1157 = vmatprep.subr.bf16.mxu0 %v1729_v38  ;;  %1239 = vmatprep.subr.bf16.mxu1 %v1732_v39  ;;  %v1804_v38 = vld [vmem:[#allocation4 + $0x4e8] ss:$20 sps:$4 sm:$0xff]  }
  0x85   :  { %v1805_v39 = vld [vmem:[#allocation4 + $0x128] ss:$20 sps:$4 sm:$0xff]  }
  0x87   :  { %1158 = vmatpush1.bf16.msra.mxu0 %v1727_v40  ;;  %1240 = vmatpush1.bf16.msra.mxu1 %v1730_v41  ;;  %v1806_v40 = vld [vmem:[#allocation4 + $0x3a8] ss:$20 sps:$4 sm:$0xff]   ;;  %v243_v41 = vlaneseq }
  0x88   :  { %1159 = vmatprep.subr.bf16.mxu0 %v1735_v42  ;;  %1241 = vmatprep.subr.bf16.mxu1 %v1738_v43 }
  0x89   :  { %v244_v42 = vshrl.u32 %v243_v41, 7 }
  0x8b   :  { %1160 = vmatpush1.bf16.msra.mxu0 %v1733_v44  ;;  %1242 = vmatpush1.bf16.msra.mxu1 %v1736_v45  ;;  %v245_v43 = vsub.s32 0, %v244_v42  ;;  %v253_v44 = vsub.s32 2, %v244_v42  ;;  %v241_v45 = vld [vmem:[%s1950_s2] sm:$0x1f] }
  0x8c   :  { %1161 = vmatprep.subr.bf16.mxu0 %v1741_v46  ;;  %1243 = vmatprep.subr.bf16.mxu1 %v1744_v47  ;;  %v249_v46 = vsub.s32 1, %v244_v42  ;;  %v257_v47 = vsub.s32 3, %v244_v42 }
  0x8f   :  { %1162 = vmatpush1.bf16.msra.mxu0 %v1739_v49  ;;  %1244 = vmatpush1.bf16.msra.mxu1 %v1742_v50  ;;  %v246_v49 = vrot.slane %v241_v45, %v245_v43  ;;  %v254_v50 = vrot.slane %v241_v45, %v253_v44 }
  0x90   :  { %1163 = vmatprep.subr.bf16.mxu0 %v1747_v51  ;;  %1245 = vmatprep.subr.bf16.mxu1 %v1750_v52  ;;  %v250_v51 = vrot.slane %v241_v45, %v249_v46  ;;  %v258_v52 = vrot.slane %v241_v45, %v257_v47 }
  0x93   :  { %1164 = vmatpush1.bf16.msra.mxu0 %v1745_v53  ;;  %1246 = vmatpush1.bf16.msra.mxu1 %v1748_v54 }
  0x94   :  { %1165 = vmatprep.subr.bf16.mxu0 %v1753_v55  ;;  %1247 = vmatprep.subr.bf16.mxu1 %v1756_v56 }
  0x97   :  { %1166 = vmatpush1.bf16.msra.mxu0 %v1751_v57  ;;  %1248 = vmatpush1.bf16.msra.mxu1 %v1754_v58 }
  0x98   :  { %1167 = vmatprep.subr.bf16.mxu0 %v1759_v59  ;;  %1249 = vmatprep.subr.bf16.mxu1 %v1762_v60 }
  0x9b   :  { %1168 = vmatpush1.bf16.msra.mxu0 %v1757_v61  ;;  %1250 = vmatpush1.bf16.msra.mxu1 %v1760_v62 }
  0x9c   :  { %1169 = vmatprep.subr.bf16.mxu0 %v1765_v63  ;;  %1251 = vmatprep.subr.bf16.mxu1 %v1768_v0  ;;  %v261_v0 = vsub.s32 4, %v244_v42 }
  0x9f   :  { %1170 = vmatpush1.bf16.msra.mxu0 %v1763_v1  ;;  %1252 = vmatpush1.bf16.msra.mxu1 %v1766_v2 }
  0xa0   :  { %1171 = vmatprep.subr.bf16.mxu0 %v1771_v3  ;;  %1253 = vmatprep.subr.bf16.mxu1 %v1774_v4  ;;  %v262_v3 = vrot.slane %v241_v45, %v261_v0 }
  0xa3   :  { %1172 = vmatpush1.bf16.msra.mxu0 %v1769_v6  ;;  %1254 = vmatpush1.bf16.msra.mxu1 %v1772_v7 }
  0xa4   :  { %1523 = vmatprep.subr.bf16.mxu0 %v1775_v9  ;;  %1545 = vmatprep.subr.bf16.mxu1 %v1776_v10 }
  0xa6   :  { %1174 = vmatmul.mubr.bf16.vlgmr.msra.gmra.mrb[0].mxu0 %v1922_v11  ;;  %1256 = vmatmul.mubr.bf16.vlgmr.msra.gmra.mrb[0].mxu1 %v1922_v11 }
  0xa7   :  { %1524 = vmatpush3.bf16.msra.mxu0 %v1777_v12  ;;  %1546 = vmatpush3.bf16.msra.mxu1 %v1778_v13 }
  0xa8   :  { %1525 = vmatprep.subr.bf16.mxu0 %v1779_v14  ;;  %1547 = vmatprep.subr.bf16.mxu1 %v1780_v15 }
  0xa9   :  { %1296 = vmatprep.mubr.bf16.mxu0 %v1910_v48  ;;  %1336 = vmatprep.mubr.bf16.mxu1 %v1918_v33  ;;  %v1793_v48 = vld [vmem:[#allocation4 + $0xb0] ss:$20 sps:$4 sm:$0xff]   ;;  %v1799_v33 = vld [vmem:[#allocation4 + $0x240] ss:$20 sps:$4 sm:$0xff]  }
  0xab   :  { %1526 = vmatpush3.bf16.msra.mxu0 %v1781_v16  ;;  %1548 = vmatpush3.bf16.msra.mxu1 %v1782_v17 }
  0xac   :  { %1527 = vmatprep.subr.bf16.mxu0 %v1783_v18  ;;  %1549 = vmatprep.subr.bf16.mxu1 %v1784_v19 }
  0xaf   :  { %1528 = vmatpush3.bf16.msra.mxu0 %v1785_v20  ;;  %1550 = vmatpush3.bf16.msra.mxu1 %v1786_v21 }
  0xb0   :  { %1529 = vmatprep.subr.bf16.mxu0 %v1787_v22  ;;  %1551 = vmatprep.subr.bf16.mxu1 %v1788_v23 }
  0xb3   :  { %1530 = vmatpush3.bf16.msra.mxu0 %v1789_v24  ;;  %1552 = vmatpush3.bf16.msra.mxu1 %v1790_v25 }
  0xb4   :  { %1531 = vmatprep.subr.bf16.mxu0 %v1791_v26  ;;  %1553 = vmatprep.subr.bf16.mxu1 %v1792_v27 }
  0xb7   :  { %1532 = vmatpush3.bf16.msra.mxu0 %v1793_v48  ;;  %1554 = vmatpush3.bf16.msra.mxu1 %v1794_v28 }
  0xb8   :  { %1533 = vmatprep.subr.bf16.mxu0 %v1795_v29  ;;  %1555 = vmatprep.subr.bf16.mxu1 %v1796_v30 }
  0xbb   :  { %1534 = vmatpush3.bf16.msra.mxu0 %v1797_v31  ;;  %1556 = vmatpush3.bf16.msra.mxu1 %v1798_v32 }
  0xbc   :  { %1535 = vmatprep.subr.bf16.mxu0 %v1799_v33  ;;  %1557 = vmatprep.subr.bf16.mxu1 %v1800_v34 }
  0xbf   :  { %1536 = vmatpush3.bf16.msra.mxu0 %v1801_v35  ;;  %1558 = vmatpush3.bf16.msra.mxu1 %v1802_v36 }
  0xc0   :  { %1537 = vmatprep.subr.bf16.mxu0 %v1803_v37  ;;  %1559 = vmatprep.subr.bf16.mxu1 %v1804_v38 }
  0xc3   :  { %1538 = vmatpush3.bf16.msra.mxu0 %v1805_v39  ;;  %1560 = vmatpush3.bf16.msra.mxu1 %v1806_v40 }
  0xc6   :  { %1297 = vmatmul.mubr.bf16.vlgmr.msra.gmra.mrb[4].mxu0 %v1914_v5  ;;  %1337 = vmatmul.mubr.bf16.vlgmr.msra.gmra.mrb[4].mxu1 %v1922_v11 }
 0x179   :  { %v1175_v53 = vpop.f32.mrb[0].mxu0  ;;  %v1257_v54 = vpop.f32.mrb[0].mxu1 }
 0x17a   :  { %v1567_v55 = vadd.f32 %v1175_v53, %v246_v49  ;;  %v1569_v5 = vadd.f32 %v1257_v54, %v254_v50  ;;  %v1177_v56 = vpop.f32.mrb[1].mxu0  ;;  %v1259_v57 = vpop.f32.mrb[1].mxu1 }
 0x17b   :  { %v1568_v58 = vadd.f32 %v1177_v56, %v250_v51  ;;  %v1570_v59 = vadd.f32 %v1259_v57, %v258_v52  ;;  %v1179_v60 = vpop.f32.mrb[2].mxu0  ;;  %v1261_v61 = vpop.f32.mrb[2].mxu1 }
 0x17c   :  { %1344 = vst [vmem:[%s1951_s3] sm:$0xff] %v1567_v55  ;;  %1520 = vst [vmem:[%s1951_s3 + $0x10] sm:$0xff] %v1569_v5  ;;  %v1180_v62 = vpop.f32.mrb[3].mxu0  ;;  %v1262_v63 = vpop.f32.mrb[3].mxu1 }
 0x17d   :  { %1519 = vst [vmem:[%s1951_s3 + $0x8] sm:$0xff] %v1568_v58  ;;  %1521 = vst [vmem:[%s1951_s3 + $0x18] sm:$0xff] %v1570_v59 }
 0x199   :  { %v1539_v1 = vpop.f32.mrb[4].mxu0  ;;  %v1561_v2 = vpop.f32.mrb[4].mxu1 }
 0x19a   :  { %v1540_v4 = vpop.f32.mrb[5].mxu0  ;;  %v1562_v6 = vpop.f32.mrb[5].mxu1 }
 0x19b   :  { %v1541_v7 = vadd.f32 %v1540_v4, %v1539_v1  ;;  %v1563_v8 = vadd.f32 %v1562_v6, %v1561_v2  ;;  %v1542_v9 = vpop.f32.mrb[6].mxu0  ;;  %v1564_v10 = vpop.f32.mrb[6].mxu1 }
 0x19c   :  { %v1543_v11 = vpop.f32.mrb[7].mxu0  ;;  %v1565_v12 = vpop.f32.mrb[7].mxu1 }
 0x19d   :  { %v1299_v13 = vadd.f32 %v1541_v7, %v262_v3 }
 0x19f   :  { %v1339_v14 = vadd.f32 %v1563_v8, %v1299_v13 }
 0x1a1   :  { %1522 = vst [vmem:[%s1951_s3 + $0x20] sm:$0xff] %v1339_v14 }
 0x1a2   :  { %1357 = vsyncpa [#allocation3], 1 }
 0x1a3   :  { %1358 = vsyncpa [#allocation5], 1 }

</bundles_post_ra>
